<compile_context>
chip_gen: v7x
topology: tpu7x:2x2x1
jax: 0.10.0
libtpu: 0.0.40
codegen_flags: <defaults>
</compile_context>

<pallas_src>
import jax
import jax.numpy as jnp
from jax.experimental import pallas as pl
from jax.experimental.pallas import tpu as pltpu


def _lane_tile(a, reps):
    """Tile `a` `reps` times along its last (lane) axis with O(log reps) concats."""
    if reps == 1:
        return a
    out, built = a, 1
    while built * 2 <= reps:
        out = jnp.concatenate([out, out], axis=-1)
        built *= 2
    if built < reps:
        out = jnp.concatenate([out, _lane_tile(a, reps - built)], axis=-1)
    return out


def _sp_kernel(x_ref, w_ref, o_ref):
    # x_ref: (nb, C, H, W)   w_ref: (C, 3C)   o_ref: (nb, C, th*W)
    nb, C, H, W = x_ref.shape
    reps = o_ref.shape[-1] // W

    # Build the fused conv operand: per batch element, the pooled map and its
    # zero-padded +-1 shifts stacked along channels -> (3C, W); all nb of them
    # concatenated along lanes -> (3C, nb*W).
    cols = []
    for b in range(nb):
        avg = jnp.mean(x_ref[b].astype(jnp.float32), axis=1)         # (C, W)
        zcol = jnp.zeros((C, 1), jnp.float32)
        left = jnp.concatenate([zcol, avg[:, : W - 1]], axis=1)      # avg[:, w-1]
        right = jnp.concatenate([avg[:, 1:], zcol], axis=1)          # avg[:, w+1]
        cols.append(jnp.concatenate([left, avg, right], axis=0))     # (3C, W)
    stacked = cols[0] if nb == 1 else jnp.concatenate(cols, axis=1)  # (3C, nb*W)

    # One MXU matmul for all three taps and all nb batch elements.
    conv = jnp.dot(w_ref[...], stacked, preferred_element_type=jnp.float32)  # (C, nb*W)

    # expand(-1, -1, H, W): lane-dense tiled store of `reps` copies of each
    # batch element's (C, W) conv result along the flattened H*W lane axis.
    for b in range(nb):
        conv_b = conv[:, b * W:(b + 1) * W]
        o_ref[b] = _lane_tile(conv_b, reps).astype(o_ref.dtype)


def _choose_tiles(N, C, H, W, itemsize):
    """Pick (nb, th): batch elements per grid step, output H-rows per grid step."""
    IN_BUDGET = 8 << 20    # single-buffered input block budget
    OUT_BUDGET = 8 << 20   # single-buffered output block budget
    nb = 1
    for d in range(N, 0, -1):
        if N % d == 0 and d * C * H * W * itemsize <= IN_BUDGET:
            nb = d
            break
    th = H
    for d in range(H, 0, -1):
        lane_ok = (d == H) or ((d * W) % 128 == 0)
        if H % d == 0 and lane_ok and nb * C * d * W * itemsize <= OUT_BUDGET:
            th = d
            break
    # If everything collapses to a single grid step but the writeback is large,
    # split the output over H so v7x megacore can shard the (mem-bound) store.
    if N // nb == 1 and th == H and nb * C * H * W * itemsize >= (2 << 20):
        for d in range(H // 2, 0, -1):
            if H % d == 0 and (d * W) % 128 == 0:
                th = d
                break
    return nb, th


def sp_forward(x, weight, types=False):
    """x: (N, C, H, W). weight: (C_out, C_in, 3) = conv taps along the un-pooled axis.

    types=False -> pool over H, conv (1,3) over W (PyTorch default branch).
    types=True  -> pool over W, conv (3,1) over H (transposed variant).
    """
    if types:
        # Swap H<->W, run the same kernel, swap back; expand() broadcasts, so this
        # is exactly equivalent to the (3,1)-kernel branch.
        y = sp_forward(jnp.swapaxes(x, 2, 3), weight, types=False)
        return jnp.swapaxes(y, 2, 3)

    N, C, H, W = x.shape
    itemsize = jnp.dtype(x.dtype).itemsize
    nb, th = _choose_tiles(N, C, H, W, itemsize)
    grid = (N // nb, H // th)

    # Fused weight: w_fused[o, k*C + c] = weight[o, c, k]  -> (C, 3C)
    w_fused = jnp.transpose(weight, (0, 2, 1)).reshape(C, 3 * C).astype(jnp.float32)

    in_block = nb * C * H * W * itemsize
    out_block = nb * C * th * W * itemsize
    w_bytes = C * 3 * C * 4
    vmem_need = 2 * (in_block + out_block) + 2 * w_bytes + (2 << 20)
    vmem_limit = int(min(max(vmem_need, 16 << 20), 128 << 20))
    # TODO(synk): feature maps whose single-batch (C, H, W) slab exceeds the ~8 MiB
    # per-buffer budget would additionally need W-tiling with a +-1 conv halo.

    cost = pl.CostEstimate(
        flops=int(N * C * H * W + 2 * N * C * (3 * C) * W),
        transcendentals=0,
        bytes_accessed=int(2 * N * C * H * W * itemsize + w_bytes),
    )

    out_flat = pl.pallas_call(
        _sp_kernel,
        out_shape=jax.ShapeDtypeStruct((N, C, H * W), x.dtype),
        grid_spec=pltpu.PrefetchScalarGridSpec(
            num_scalar_prefetch=0,
            grid=grid,
            in_specs=[
                # Full-H slab per batch block; index ignores the H-tile axis so the
                # block is DMA'd once per batch block and kept resident across j.
                pl.BlockSpec((nb, C, H, W), lambda b, j: (b, 0, 0, 0)),
                pl.BlockSpec((C, 3 * C), lambda b, j: (0, 0)),
            ],
            out_specs=pl.BlockSpec((nb, C, th * W), lambda b, j: (b, 0, j)),
        ),
        compiler_params=pltpu.CompilerParams(
            dimension_semantics=("parallel", "parallel"),
            vmem_limit_bytes=vmem_limit,
        ),
        cost_estimate=cost,
    )(x, w_fused)

    return out_flat.reshape(N, C, H, W)


def sp_reference(x, weight, types=False):
    """Pure-JAX reference mirroring the PyTorch module."""
    if types:
        return jnp.swapaxes(sp_reference(jnp.swapaxes(x, 2, 3), weight, types=False), 2, 3)
    N, C, H, W = x.shape
    avg = jnp.mean(x.astype(jnp.float32), axis=2)     # (N, C, W)
    pad = jnp.pad(avg, ((0, 0), (0, 0), (1, 1)))      # (N, C, W+2)
    out = (
        jnp.einsum("oc,ncw->now", weight[:, :, 0], pad[:, :, 0:W])
        + jnp.einsum("oc,ncw->now", weight[:, :, 1], pad[:, :, 1:W + 1])
        + jnp.einsum("oc,ncw->now", weight[:, :, 2], pad[:, :, 2:W + 2])
    )                                                 # (N, C, W)
    return jnp.broadcast_to(out[:, :, None, :], (N, C, H, W)).astype(x.dtype)


if __name__ == "__main__":
    key = jax.random.PRNGKey(0)
    N, C, H, W = 2, 4, 16, 16

    kx, kw = jax.random.split(key)
    x = jax.random.normal(kx, (N, C, H, W), dtype=jnp.float32)
    # Deterministic Conv2d weight, shape (C_out, C_in, 3) == (C, C, 1*3 taps).
    fan_in = C * 3
    bound = 1.0 / (fan_in ** 0.5)
    weight = jax.random.uniform(kw, (C, C, 3), dtype=jnp.float32,
                                minval=-bound, maxval=bound)

    out = jax.block_until_ready(sp_forward(x, weight, types=False))
    ref = sp_reference(x, weight, types=False)
    assert out.shape == (N, C, H, W)
    assert jnp.allclose(out, ref, atol=1e-5, rtol=1e-5), "mismatch vs reference"

    # Also exercise the types=True branch once.
    out_t = jax.block_until_ready(sp_forward(x, weight, types=True))
    ref_t = sp_reference(x, weight, types=True)
    assert jnp.allclose(out_t, ref_t, atol=1e-5, rtol=1e-5), "mismatch (types=True)"

    print("KERNEL_OK")
</pallas_src>

<mosaic_0001>
module attributes {stable_mosaic.version = 11 : i64} {
  func.func @_sp_kernel(%arg0: i32, %arg1: i32, %arg2: memref<2x4x16x16xf32, #tpu.memory_space<vmem>>, %arg3: memref<4x12xf32, #tpu.memory_space<vmem>>, %arg4: memref<2x4x256xf32, #tpu.memory_space<vmem>>) attributes {dimension_semantics = [#tpu.dimension_semantics<parallel>, #tpu.dimension_semantics<parallel>], iteration_bounds = array<i64: 1, 1>, scalar_prefetch = 0 : i64, scratch_operands = 0 : i64, tpu.core_type = #tpu.core_type<tc>, window_params = [{transform_indices = @transform_0, window_bounds = array<i64: 2, 4, 16, 16>}, {pipeline_mode = #tpu.pipeline_mode<synchronous>, transform_indices = @transform_1, window_bounds = array<i64: 4, 12>}, {transform_indices = @transform_2, window_bounds = array<i64: 2, 4, 256>}]} {
    %c0 = arith.constant 0 : index
    %c0_0 = arith.constant 0 : index
    %c0_1 = arith.constant 0 : index
    %c0_2 = arith.constant 0 : index
    %0 = vector.load %arg2[%c0, %c0_0, %c0_1, %c0_2] : memref<2x4x16x16xf32, #tpu.memory_space<vmem>>, vector<1x4x16x16xf32>
    %1 = vector.shape_cast %0 : vector<1x4x16x16xf32> to vector<4x16x16xf32>
    %cst = arith.constant dense<0.000000e+00> : vector<4x16xf32>
    %2 = vector.multi_reduction <add>, %1, %cst [1] : vector<4x16x16xf32> to vector<4x16xf32>
    %cst_3 = arith.constant 1.600000e+01 : f32
    %3 = vector.broadcast %cst_3 : f32 to vector<4x16xf32>
    %4 = arith.divf %2, %3 : vector<4x16xf32>
    %cst_4 = arith.constant 0.000000e+00 : f32
    %5 = vector.broadcast %cst_4 : f32 to vector<4x1xf32>
    %6 = vector.extract_strided_slice %4 {offsets = [0, 0], sizes = [4, 15], strides = [1, 1]} : vector<4x16xf32> to vector<4x15xf32>
    %7 = tpu.concatenate %5, %6 in 1 : vector<4x1xf32>, vector<4x15xf32> -> vector<4x16xf32>
    %8 = vector.extract_strided_slice %4 {offsets = [0, 1], sizes = [4, 15], strides = [1, 1]} : vector<4x16xf32> to vector<4x15xf32>
    %9 = tpu.concatenate %8, %5 in 1 : vector<4x15xf32>, vector<4x1xf32> -> vector<4x16xf32>
    %10 = tpu.concatenate %7, %4, %9 in 0 : vector<4x16xf32>, vector<4x16xf32>, vector<4x16xf32> -> vector<12x16xf32>
    %c1 = arith.constant 1 : index
    %c0_5 = arith.constant 0 : index
    %c0_6 = arith.constant 0 : index
    %c0_7 = arith.constant 0 : index
    %11 = vector.load %arg2[%c1, %c0_5, %c0_6, %c0_7] : memref<2x4x16x16xf32, #tpu.memory_space<vmem>>, vector<1x4x16x16xf32>
    %12 = vector.shape_cast %11 : vector<1x4x16x16xf32> to vector<4x16x16xf32>
    %cst_8 = arith.constant dense<0.000000e+00> : vector<4x16xf32>
    %13 = vector.multi_reduction <add>, %12, %cst_8 [1] : vector<4x16x16xf32> to vector<4x16xf32>
    %cst_9 = arith.constant 1.600000e+01 : f32
    %14 = vector.broadcast %cst_9 : f32 to vector<4x16xf32>
    %15 = arith.divf %13, %14 : vector<4x16xf32>
    %cst_10 = arith.constant 0.000000e+00 : f32
    %16 = vector.broadcast %cst_10 : f32 to vector<4x1xf32>
    %17 = vector.extract_strided_slice %15 {offsets = [0, 0], sizes = [4, 15], strides = [1, 1]} : vector<4x16xf32> to vector<4x15xf32>
    %18 = tpu.concatenate %16, %17 in 1 : vector<4x1xf32>, vector<4x15xf32> -> vector<4x16xf32>
    %19 = vector.extract_strided_slice %15 {offsets = [0, 1], sizes = [4, 15], strides = [1, 1]} : vector<4x16xf32> to vector<4x15xf32>
    %20 = tpu.concatenate %19, %16 in 1 : vector<4x15xf32>, vector<4x1xf32> -> vector<4x16xf32>
    %21 = tpu.concatenate %18, %15, %20 in 0 : vector<4x16xf32>, vector<4x16xf32>, vector<4x16xf32> -> vector<12x16xf32>
    %22 = tpu.concatenate %10, %21 in 1 : vector<12x16xf32>, vector<12x16xf32> -> vector<12x32xf32>
    %c0_11 = arith.constant 0 : index
    %c0_12 = arith.constant 0 : index
    %23 = vector.load %arg3[%c0_11, %c0_12] : memref<4x12xf32, #tpu.memory_space<vmem>>, vector<4x12xf32>
    %cst_13 = arith.constant dense<0.000000e+00> : vector<4x32xf32>
    %24 = tpu.matmul %23, %22, %cst_13 {dimension_numbers = #tpu.dot_dimension_numbers<[1], [0], [0], [1], [0, 0, 1, 1], [], []>} : vector<4x12xf32>, vector<12x32xf32>, vector<4x32xf32> -> vector<4x32xf32>
    %25 = vector.extract_strided_slice %24 {offsets = [0, 0], sizes = [4, 16], strides = [1, 1]} : vector<4x32xf32> to vector<4x16xf32>
    %26 = tpu.concatenate %25, %25 in 1 : vector<4x16xf32>, vector<4x16xf32> -> vector<4x32xf32>
    %27 = tpu.concatenate %26, %26 in 1 : vector<4x32xf32>, vector<4x32xf32> -> vector<4x64xf32>
    %28 = tpu.concatenate %27, %27 in 1 : vector<4x64xf32>, vector<4x64xf32> -> vector<4x128xf32>
    %29 = tpu.concatenate %28, %28 in 1 : vector<4x128xf32>, vector<4x128xf32> -> vector<4x256xf32>
    %c0_14 = arith.constant 0 : index
    %c0_15 = arith.constant 0 : index
    %c0_16 = arith.constant 0 : index
    %30 = vector.load %arg4[%c0_14, %c0_15, %c0_16] : memref<2x4x256xf32, #tpu.memory_space<vmem>>, vector<1x4x256xf32>
    %31 = vector.shape_cast %30 : vector<1x4x256xf32> to vector<4x256xf32>
    %32 = vector.shape_cast %29 : vector<4x256xf32> to vector<1x4x256xf32>
    tpu.vector_store %arg4[%c0_14, %c0_15, %c0_16], %32 {strides = array<i32>} : memref<2x4x256xf32, #tpu.memory_space<vmem>>, vector<1x4x256xf32>,
    %33 = vector.extract_strided_slice %24 {offsets = [0, 16], sizes = [4, 16], strides = [1, 1]} : vector<4x32xf32> to vector<4x16xf32>
    %34 = tpu.concatenate %33, %33 in 1 : vector<4x16xf32>, vector<4x16xf32> -> vector<4x32xf32>
    %35 = tpu.concatenate %34, %34 in 1 : vector<4x32xf32>, vector<4x32xf32> -> vector<4x64xf32>
    %36 = tpu.concatenate %35, %35 in 1 : vector<4x64xf32>, vector<4x64xf32> -> vector<4x128xf32>
    %37 = tpu.concatenate %36, %36 in 1 : vector<4x128xf32>, vector<4x128xf32> -> vector<4x256xf32>
    %c1_17 = arith.constant 1 : index
    %c0_18 = arith.constant 0 : index
    %c0_19 = arith.constant 0 : index
    %38 = vector.load %arg4[%c1_17, %c0_18, %c0_19] : memref<2x4x256xf32, #tpu.memory_space<vmem>>, vector<1x4x256xf32>
    %39 = vector.shape_cast %38 : vector<1x4x256xf32> to vector<4x256xf32>
    %40 = vector.shape_cast %37 : vector<4x256xf32> to vector<1x4x256xf32>
    tpu.vector_store %arg4[%c1_17, %c0_18, %c0_19], %40 {strides = array<i32>} : memref<2x4x256xf32, #tpu.memory_space<vmem>>, vector<1x4x256xf32>,
    return
  }
  func.func @transform_0(%arg0: i32, %arg1: i32) -> (i32, i32, i32, i32) {
    %c0_i32 = arith.constant 0 : i32
    %c0_i32_0 = arith.constant 0 : i32
    %c0_i32_1 = arith.constant 0 : i32
    %c0_i32_2 = arith.constant 0 : i32
    return %arg0, %c0_i32, %c0_i32_0, %c0_i32_1 : i32, i32, i32, i32
  }
  func.func @transform_1(%arg0: i32, %arg1: i32) -> (i32, i32) {
    %c0_i32 = arith.constant 0 : i32
    %c0_i32_0 = arith.constant 0 : i32
    %c0_i32_1 = arith.constant 0 : i32
    return %c0_i32, %c0_i32_0 : i32, i32
  }
  func.func @transform_2(%arg0: i32, %arg1: i32) -> (i32, i32, i32) {
    %c0_i32 = arith.constant 0 : i32
    %c0_i32_0 = arith.constant 0 : i32
    return %arg0, %c0_i32, %arg1 : i32, i32, i32
  }
}

</mosaic_0001>

<bundles_post_ra>
// kernel: tpu_custom_call.1
= control target key start
LH: loop header
LB: loop body
LE: loop exit
PB: predicated region body
PF: predicated region fallthrough
CT: control target
= control target key end

     0   :  { %7 = vsyncpa [#allocation3], 0  ;;  %s549_s0 = inlined_call_operand.hbm [shape: f32[2,4,16,16], index: 0, kind: input, shape index: {}]   ;;  %s550_s1 = inlined_call_operand.hbm [shape: f32[4,12], index: 1, kind: input, shape index: {}]   ;;  %s551_s2 = inlined_call_operand.hbm [shape: f32[2,4,256], index: 2, kind: output, shape index: {}]  }
   0x1   :  { %8 = vsyncpa [#allocation6], 0 }
   0x2   :  { %9 = vsyncpa [#allocation4], 0  ;;  %s440_s9 = smov [#allocation2]   ;;  %s368_s13 = scalar_lea.hbm %s549_s0, 2048 }
   0x3   :  { %s15_s10 = sshll.u32 %s440_s9, 4  ;;  %p369_p0 = scmp.ne.s32.totalorder %s549_s0, %s368_s13  ;;  %s16_s10 = int_to_ptr.vmem [resolvable:$true] %s15_s10 }
   0x4   :  { %p372_p1 = scmp.lt.u32.totalorder %s368_s13, %s549_s0 }
   0x6   :  { %p374_p2 = pnand %p372_p1, %p369_p0 }
   0x8   :  { %377 = shalt.err (!%p374_p2)
}
   0x9   :  { %s378_s18 = scalar_lea.vmem %s16_s10, 2048  ;;  %p383_p4 = scmp.lt.s32.totalorder %s16_s10, %s16_s10 }
   0xa   :  { %p379_p3 = scmp.ne.s32.totalorder %s16_s10, %s378_s18  ;;  %p384_p5 = scmp.lt.s32.totalorder %s378_s18, %s378_s18 }
   0xc   :  { %p385_p6 = por %p384_p5, %p383_p4 }
   0xe   :  { %p386_p7 = pnand %p385_p6, %p379_p3 }
  0x10   :  { %389 = shalt.err (!%p386_p7)
}
  0x11   :  { %s441_s19 = smov 128   ;;  %s442_s20 = smov 8  }
  0x12   :  { %21 = dma.hbm_to_vmem [thread:$0]  %s549_s0, 2048, %s16_s10, [#allocation3], %s441_s19, %s441_s19, %s442_s20  }
  0x13   :  { %s443_s23 = smov [#allocation5]   ;;  %s390_s27 = scalar_lea.hbm %s550_s1, 64 }
  0x14   :  { %s28_s24 = sshll.u32 %s443_s23, 4  ;;  %p391_p8 = scmp.ne.s32.totalorder %s550_s1, %s390_s27  ;;  %s29_s24 = int_to_ptr.vmem [resolvable:$true] %s28_s24 }
  0x15   :  { %p394_p9 = scmp.lt.u32.totalorder %s390_s27, %s550_s1 }
  0x17   :  { %p396_p10 = pnand %p394_p9, %p391_p8 }
  0x19   :  { %399 = shalt.err (!%p396_p10)
}
  0x1a   :  { %s400_s4 = scalar_lea.vmem %s29_s24, 64  ;;  %p405_p12 = scmp.lt.s32.totalorder %s29_s24, %s29_s24 }
  0x1b   :  { %p401_p11 = scmp.ne.s32.totalorder %s29_s24, %s400_s4  ;;  %p406_p13 = scmp.lt.s32.totalorder %s400_s4, %s400_s4 }
  0x1d   :  { %p407_p0 = por %p406_p13, %p405_p12 }
  0x1f   :  { %p408_p1 = pnand %p407_p0, %p401_p11 }
  0x21   :  { %411 = shalt.err (!%p408_p1)
}
  0x22   :  { %31 = dma.hbm_to_vmem [thread:$0]  %s550_s1, 64, %s29_s24, [#allocation6]  }
  0x23   :  { %434 = dma.done.wait [#allocation3], 2048  }
  0x24   :  { %435 = vsyncadd [#allocation3], 4294965248 }
  0x25   :  { %436 = dma.done.wait [#allocation6], 64  }
  0x26   :  { %437 = vsyncadd [#allocation6], 4294967232  ;;  %vm46_vm0 = vcmask 130048   ;;  %v118_v0 = vld [vmem:[#allocation2 + $0x40] sm:$0xff]  ;;  %v119_v1 = vld [vmem:[#allocation2 + $0x48] sm:$0xff]  ;;  %vm92_vm1 = vcmask 1041409  }
  0x27   :  { %v120_v2 = vld [vmem:[#allocation2 + $0x50] sm:$0xff]  ;;  %v121_v3 = vld [vmem:[#allocation2 + $0x58] sm:$0xff]  ;;  %v122_v4 = vld [vmem:[#allocation2 + $0x60] sm:$0xff]  ;;  %v126_v6 = vsel %vm46_vm0, %v118_v0, 0.0  ;;  %v127_v7 = vsel %vm46_vm0, %v119_v1, 0.0  ;;  %vm94_vm2 = vcmask 1042434  }
  0x28   :  { %v123_v5 = vld [vmem:[#allocation2 + $0x68] sm:$0xff]  ;;  %v135_v8 = vsel %vm46_vm0, %v120_v2, 0.0  ;;  %v124_v9 = vld [vmem:[#allocation2 + $0x70] sm:$0xff]  ;;  %v125_v10 = vld [vmem:[#allocation2 + $0x78] sm:$0xff]  ;;  %v128_v11 = vadd.f32 %v127_v7, %v126_v6  ;;  %v136_v12 = vsel %vm46_vm0, %v121_v3, 0.0  ;;  %v144_v13 = vsel %vm46_vm0, %v122_v4, 0.0 }
  0x29   :  { %v145_v14 = vsel %vm46_vm0, %v123_v5, 0.0  ;;  %v38_v15 = vld [vmem:[#allocation2] sm:$0xff]  ;;  %v137_v16 = vadd.f32 %v136_v12, %v135_v8  ;;  %v153_v18 = vsel %vm46_vm0, %v124_v9, 0.0  ;;  %v154_v19 = vsel %vm46_vm0, %v125_v10, 0.0  ;;  %v39_v20 = vld [vmem:[#allocation2 + $0x8] sm:$0xff]  ;;  %v40_v21 = vld [vmem:[#allocation2 + $0x10] sm:$0xff] }
  0x2a   :  { %v146_v17 = vadd.f32 %v145_v14, %v144_v13  ;;  %v41_v22 = vld [vmem:[#allocation2 + $0x18] sm:$0xff]  ;;  %v129_v23 = vrot.slane %v128_v11, 4  ;;  %v155_v24 = vadd.f32 %v154_v19, %v153_v18  ;;  %v47_v25 = vsel %vm46_vm0, %v38_v15, 0.0  ;;  %v42_v39 = vld [vmem:[#allocation2 + $0x20] sm:$0xff]  ;;  %v43_v40 = vld [vmem:[#allocation2 + $0x28] sm:$0xff]  ;;  %s444_s1 = smov 1  }
  0x2b   :  { %v48_v26 = vsel %vm46_vm0, %v39_v20, 0.0  ;;  %v138_v27 = vrot.slane %v137_v16, 4  ;;  %v56_v30 = vsel %vm46_vm0, %v40_v21, 0.0  ;;  %v57_v33 = vsel %vm46_vm0, %v41_v22, 0.0  ;;  %v44_v46 = vld [vmem:[#allocation2 + $0x30] sm:$0xff]  ;;  %v45_v55 = vld [vmem:[#allocation2 + $0x38] sm:$0xff] }
  0x2c   :  { %v147_v28 = vrot.slane %v146_v17, 4  ;;  %v49_v29 = vadd.f32 %v48_v26, %v47_v25  ;;  %v130_v31 = vadd.f32 %v129_v23, %v128_v11  ;;  %v156_v32 = vrot.slane %v155_v24, 4  ;;  %s445_s6 = smov 127   ;;  %s449_s7 = smov 16  }
  0x2d   :  { %v139_v34 = vadd.f32 %v138_v27, %v137_v16  ;;  %v58_v41 = vadd.f32 %v57_v33, %v56_v30  ;;  %vm108_vm3 = vcmask 1045509   ;;  %vm110_vm4 = vcmask 1046534   ;;  %s451_s8 = smov 112   ;;  %s452_s9 = smov 32  }
  0x2e   :  { %v148_v35 = vadd.f32 %v147_v28, %v146_v17  ;;  %v50_v36 = vrot.slane %v49_v29, 4  ;;  %v131_v37 = vrot.slane %v130_v31, 2  ;;  %v157_v38 = vadd.f32 %v156_v32, %v155_v24  ;;  %s453_s10 = smov 64   ;;  %s454_s11 = smov [#allocation7]  }
  0x2f   :  { %v140_v42 = vrot.slane %v139_v34, 2  ;;  %vm96_vm5 = vcmask 1043459   ;;  %v59_v48 = vrot.slane %v58_v41, 4  ;;  %v65_v51 = vsel %vm46_vm0, %v42_v39, 0.0  ;;  %s319_s12 = sshll.u32 %s454_s11, 4  ;;  %s320_s12 = int_to_ptr.vmem [resolvable:$true] %s319_s12 }
  0x30   :  { %v149_v43 = vrot.slane %v148_v35, 2  ;;  %v132_v44 = vadd.f32 %v131_v37, %v130_v31  ;;  %v158_v45 = vrot.slane %v157_v38, 2  ;;  %v51_v47 = vadd.f32 %v50_v36, %v49_v29  ;;  %s412_s13 = scalar_lea.vmem %s320_s12, 256  ;;  %p417_p3 = scmp.lt.s32.totalorder %s320_s12, %s320_s12 }
  0x31   :  { %v141_v49 = vadd.f32 %v140_v42, %v139_v34  ;;  %v66_v52 = vsel %vm46_vm0, %v43_v40, 0.0  ;;  %v60_v57 = vadd.f32 %v59_v48, %v58_v41  ;;  %v74_v61 = vsel %vm46_vm0, %v44_v46, 0.0  ;;  %p413_p2 = scmp.ne.s32.totalorder %s320_s12, %s412_s13  ;;  %p418_p4 = scmp.lt.s32.totalorder %s412_s13, %s412_s13 }
  0x32   :  { %v150_v50 = vadd.f32 %v149_v43, %v148_v35  ;;  %v133_v53 = vrot.slane %v132_v44, 1  ;;  %v159_v54 = vadd.f32 %v158_v45, %v157_v38  ;;  %v52_v56 = vrot.slane %v51_v47, 2 }
  0x33   :  { %v142_v58 = vrot.slane %v141_v49, 1  ;;  %v67_v60 = vadd.f32 %v66_v52, %v65_v51  ;;  %v61_v1 = vrot.slane %v60_v57, 2  ;;  %v75_v5 = vsel %vm46_vm0, %v45_v55, 0.0  ;;  %p419_p5 = por %p418_p4, %p417_p3 }
  0x34   :  { %v151_v59 = vrot.slane %v150_v50, 1  ;;  %v134_v62 = vadd.f32 %v133_v53, %v132_v44  ;;  %v160_v63 = vrot.slane %v159_v54, 1  ;;  %v53_v0 = vadd.f32 %v52_v56, %v51_v47 }
  0x35   :  { %v143_v2 = vadd.f32 %v142_v58, %v141_v49  ;;  %v68_v4 = vrot.slane %v67_v60, 4  ;;  %v62_v9 = vadd.f32 %v61_v1, %v60_v57  ;;  %v76_v13 = vadd.f32 %v75_v5, %v74_v61  ;;  %p420_p6 = pnand %p419_p5, %p413_p2 }
  0x36   :  { %v152_v3 = vadd.f32 %v151_v59, %v150_v50  ;;  %v161_v6 = vadd.f32 %v160_v63, %v159_v54  ;;  %v162_v7 = vmul.f32 0.0625, %v134_v62  ;;  %v54_v8 = vrot.slane %v53_v0, 1  ;;  %v196_v63 = vld [vmem:[#allocation5] sm:$0xf] }
  0x37   :  { %v163_v10 = vmul.f32 0.0625, %v143_v2  ;;  %v69_v12 = vadd.f32 %v68_v4, %v67_v60  ;;  %vm112_vm6 = vcmask 1047559   ;;  %v63_v16 = vrot.slane %v62_v9, 1 }
  0x38   :  { %v164_v11 = vmul.f32 0.0625, %v152_v3  ;;  %v165_v14 = vmul.f32 0.0625, %v161_v6  ;;  %v55_v15 = vadd.f32 %v54_v8, %v53_v0  ;;  %v77_v20 = vrot.slane %v76_v13, 4 }
  0x39   :  { %v170_v17 = vsel %vm92_vm1, %v163_v10, %v162_v7  ;;  %v181_v18 = vsel %vm108_vm3, %v163_v10, %v162_v7  ;;  %v70_v19 = vrot.slane %v69_v12, 2  ;;  %v64_v23 = vadd.f32 %v63_v16, %v62_v9 }
  0x3a   :  { %v171_v21 = vsel %vm94_vm2, %v164_v11, %v170_v17  ;;  %v182_v22 = vsel %vm110_vm4, %v164_v11, %v181_v18  ;;  %v78_v27 = vadd.f32 %v77_v20, %v76_v13  ;;  %v84_v28 = vmul.f32 0.0625, %v55_v15 }
  0x3b   :  { %v172_v24 = vsel %vm96_vm5, %v165_v14, %v171_v21  ;;  %v183_v25 = vsel %vm112_vm6, %v165_v14, %v182_v22  ;;  %v71_v26 = vadd.f32 %v70_v19, %v69_v12  ;;  %v85_v29 = vmul.f32 0.0625, %v64_v23 }
  0x3c   :  { %173 = vrot.lane.b32.xlu0 %v172_v24, %s444_s1  ;;  %v79_v31 = vrot.slane %v78_v27, 2  ;;  %vm101_vm7 = vcmask 7168   ;;  %v446_v44 = vmov 0.0|0.0   ;;  %vm447_vm8 = vmmov 0  }
  0x3d   :  { %v72_v30 = vrot.slane %v71_v26, 1  ;;  %v109_v32 = vsel %vm108_vm3, %v85_v29, %v84_v28  ;;  %v93_v37 = vsel %vm92_vm1, %v85_v29, %v84_v28  ;;  %344 = vmatprep.subr.bf16.mxu0 %v446_v44  ;;  %v448_v46 = vmov 0.0  }
  0x3e   :  { %v80_v34 = vadd.f32 %v79_v31, %v78_v27  ;;  %341 = vmatprep.mubr.msk.f32.mxu0 %vm447_vm8, %v448_v46  ;;  %vm106_vm9 = vcmask 121856   ;;  %vm115_vm10 = vcmask 1043456   ;;  %vm450_vm11 = vmmov 1  }
  0x3f   :  { %v73_v33 = vadd.f32 %v72_v30, %v71_v26  ;;  %vm346_vm12 = vmpackc.low %vm115_vm10, %vm450_vm11  ;;  %vm197_vm13 = vcmask 97280   ;;  %vm283_vm14 = vcmask 261120   ;;  %vm289_vm15 = vcmask 523264  }
  0x40   :  { %177 = vrot.lane.b32.xlu0 %v172_v24, %s445_s6  ;;  %v81_v35 = vrot.slane %v80_v34, 1 }
  0x41   :  { %v86_v36 = vmul.f32 0.0625, %v73_v33 }
  0x42   :  { %v82_v38 = vadd.f32 %v81_v35, %v80_v34 }
  0x43   :  { %v111_v39 = vsel %vm110_vm4, %v86_v36, %v109_v32  ;;  %v95_v40 = vsel %vm94_vm2, %v86_v36, %v93_v37 }
  0x44   :  { %v87_v41 = vmul.f32 0.0625, %v82_v38 }
  0x46   :  { %v97_v42 = vsel %vm96_vm5, %v87_v41, %v95_v40  ;;  %v113_v43 = vsel %vm112_vm6, %v87_v41, %v111_v39 }
  0x47   :  { %98 = vrot.lane.b32.xlu1 %v97_v42, %s444_s1 }
  0x4b   :  { %103 = vrot.lane.b32.xlu1 %v97_v42, %s445_s6 }
  0xae   :  { %v174_v45 = vpop.permute.xlu0 %173 }
  0xaf   :  { %v176_v47 = vsel %vm101_vm7, 0.0, %v174_v45 }
  0xb0   :  { %v185_v49 = vsel %vm115_vm10, %v176_v47, %v183_v25 }
  0xb2   :  { %v178_v48 = vpop.permute.xlu0 %177 }
  0xb3   :  { %v180_v50 = vsel %vm106_vm9, %v178_v48, 0.0 }
  0xb4   :  { %v363_v51 = vpack.i.bf16 %v180_v50, %v185_v49 }
  0xb6   :  { %364 = vrot.lane.b32.xlu0 %v363_v51, %s449_s7 }
  0xb9   :  { %v99_v52 = vpop.permute.xlu1 %98 }
  0xba   :  { %v102_v53 = vsel %vm101_vm7, 0.0, %v99_v52 }
  0xbb   :  { %v116_v54 = vsel %vm115_vm10, %v102_v53, %v113_v43 }
  0xbd   :  { %v104_v55 = vpop.permute.xlu1 %103 }
  0xbe   :  { %v107_v57 = vsel %vm106_vm9, %v104_v55, 0.0 }
 0x128   :  { %v365_v56 = vpop.permute.xlu0 %364 }
 0x129   :  { %v367_v58 = vunpack.i.h.bf16 %v365_v56  ;;  %v366_v59 = vunpack.i.l.bf16 %v365_v56 }
 0x12b   :  { %v194_v60 = vsel %vm46_vm0, %v116_v54, %v366_v59  ;;  %v195_v61 = vsel %vm46_vm0, %v107_v57, %v367_v58 }
 0x12c   :  { %v345_v62 = vpack.c.bf16 %v195_v61, %v194_v60 }
 0x12e   :  { %347 = vmatpush3.bf16.msk.msra.mxu0 %vm346_vm12, %v345_v62 }
 0x131   :  { %342 = vmatmul.mubr.msk.f32.vlgmr.msra.gmra.mrb[0].mxu0 %vm197_vm13, %v196_v63 }
 0x204   :  { %v270_v0 = vpop.f32.mrb[0].mxu0 }
 0x205   :  { %295 = vrot.lane.b32.xlu0 %v270_v0, %s451_s8  ;;  %275 = vrot.lane.b32.xlu1 %v270_v0, %s449_s7  ;;  %v343_v1 = vpop.f32.mrb[1].mxu0 }
 0x277   :  { %v296_v2 = vpop.permute.xlu0 %295  ;;  %v276_v3 = vpop.permute.xlu1 %275 }
 0x278   :  { %v298_v4 = vsel %vm46_vm0, %v296_v2, %v270_v0  ;;  %v278_v5 = vsel %vm46_vm0, %v270_v0, %v276_v3 }
 0x279   :  { %300 = vrot.lane.b32.xlu0 %v298_v4, %s452_s9  ;;  %280 = vrot.lane.b32.xlu1 %v278_v5, %s452_s9 }
 0x2eb   :  { %v301_v6 = vpop.permute.xlu0 %300  ;;  %v281_v7 = vpop.permute.xlu1 %280 }
 0x2ec   :  { %v303_v8 = vsel %vm283_vm14, %v298_v4, %v301_v6  ;;  %v284_v9 = vsel %vm283_vm14, %v278_v5, %v281_v7 }
 0x2ed   :  { %305 = vrot.lane.b32.xlu0 %v303_v8, %s453_s10  ;;  %286 = vrot.lane.b32.xlu1 %v284_v9, %s453_s10 }
 0x35f   :  { %v306_v10 = vpop.permute.xlu0 %305  ;;  %v287_v11 = vpop.permute.xlu1 %286 }
 0x360   :  { %v308_v12 = vsel %vm289_vm15, %v303_v8, %v306_v10  ;;  %v290_v13 = vsel %vm289_vm15, %v284_v9, %v287_v11 }
 0x361   :  { %v310_v14 = vcombine.low %v308_v12, %v308_v12  ;;  %v292_v15 = vcombine.low %v290_v13, %v290_v13 }
 0x363   :  { %313 = vst [vmem:[#allocation7 + $0x8] sm:$0xff] %v310_v14  ;;  %294 = vst [vmem:[#allocation7] sm:$0xff] %v292_v15 }
 0x364   :  { %423 = shalt.err (!%p420_p6)
}
 0x365   :  { %s424_s16 = scalar_lea.hbm %s551_s2, 256 }
 0x366   :  { %p425_p7 = scmp.ne.s32.totalorder %s551_s2, %s424_s16  ;;  %p428_p8 = scmp.lt.u32.totalorder %s424_s16, %s551_s2 }
 0x368   :  { %p430_p9 = pnand %p428_p8, %p425_p7 }
 0x36a   :  { %433 = shalt.err (!%p430_p9)
}
 0x36b   :  { %325 = dma.vmem_to_hbm [thread:$0]  %s320_s12, 256, %s551_s2, [#allocation4], %s441_s19, %s441_s19, %s442_s20  }
 0x36c   :  { %438 = dma.done.wait [#allocation4], 256  }
 0x36d   :  { %439 = vsyncadd [#allocation4], 4294967040 }
 0x36e   :  { %329 = vsyncpa [#allocation3], 1 }
 0x36f   :  { %330 = vsyncpa [#allocation6], 1 }
 0x370   :  { %331 = vsyncpa [#allocation4], 1 }

</bundles_post_ra>
